<compile_context>
chip_gen: v6e
topology: v6e:2x2x1
jax: 0.10.0
libtpu: 0.0.40
codegen_flags: <defaults>
</compile_context>

<pallas_src>
import functools

import jax
import jax.numpy as jnp
from jax.experimental import pallas as pl
from jax.experimental.pallas import tpu as pltpu

F32 = jnp.float32
BF16 = jnp.bfloat16

# ----- synthetic FLAGS -------------------------------------------------------------
GCN_N_NUM = 10          # FLAGS.gcn_n_num
GCN_SUP_NUM = 7         # FLAGS.gcn_sup_num
OBJ_C = 6               # FLAGS.obj_c   (128+128+256+256+512+6 = 1286 channels)
OUTPUT_CHANNELS = 1286  # FLAGS.output_channels (unused in forward)

_VMEM_LIMIT = 48 * 1024 * 1024   # <= 56 MiB so the same params ship to v7x (64 MiB phys)


def _cp(n_grid_axes):
    return pltpu.CompilerParams(
        dimension_semantics=("parallel",) * n_grid_axes,
        vmem_limit_bytes=_VMEM_LIMIT)


def _tile_rows(v, target=256):
    """Largest row (vertex) tile <= target that divides v and keeps 8-row alignment."""
    if v <= target:
        return v
    t = (target // 8) * 8
    while t > 8 and v % t:
        t -= 8
    return t if (t >= 8 and v % t == 0) else v


def _tile_cols(c, target=512):
    """Largest 128-multiple output-channel tile <= target dividing c (else full c)."""
    if c <= target:
        return c
    for t in range((target // 128) * 128, 127, -128):
        if c % t == 0:
            return t
    return c


# ====================================================================================
# Pallas kernels
# ====================================================================================
def _sqdist_kernel(t_ref, s_ref, s2_ref, o_ref):
    """Per (batch, row-tile) pairwise squared distance |t|^2 + |s|^2 - 2 t.s."""
    t = t_ref[0]                                       # (tt, D) f32
    s = s_ref[0]                                       # (V2, D) f32
    dn = (((1,), (1,)), ((), ()))                      # contract last dims -> t @ s^T
    inner = jax.lax.dot_general(t, s, dn, preferred_element_type=F32)   # (tt, V2)
    t2 = jnp.sum(t * t, axis=1, keepdims=True)                          # (tt, 1)
    o_ref[0] = (t2 - 2.0 * inner) + s2_ref[0]                           # + (1, V2)


def pairwise_sqdist(t, s):
    B, V1, D = t.shape
    V2 = s.shape[1]
    s2 = jnp.sum(s * s, axis=2)[:, None, :]            # (B, 1, V2), tiny, stays in XLA
    tt = _tile_rows(V1)
    return pl.pallas_call(
        _sqdist_kernel,
        out_shape=jax.ShapeDtypeStruct((B, V1, V2), F32),
        grid=(B, V1 // tt),
        in_specs=[pl.BlockSpec((1, tt, D), lambda b, ti: (b, ti, 0)),
                  pl.BlockSpec((1, V2, D), lambda b, ti: (b, 0, 0)),
                  pl.BlockSpec((1, 1, V2), lambda b, ti: (b, 0, 0))],
        out_specs=pl.BlockSpec((1, tt, V2), lambda b, ti: (b, ti, 0)),
        compiler_params=_cp(2),
    )(t, s, s2)


def _matmul_fused_kernel(x_ref, w_ref, b_ref, sc_ref, sh_ref, o_ref, *, slope):
    """Conv1d(k=1) tile: (tv, K)@(K, tcn) + bias, folded BN (scale/shift) + LeakyReLU."""
    y = jnp.dot(x_ref[0], w_ref[...], preferred_element_type=F32)
    y = y + b_ref[...]
    y = y * sc_ref[...] + sh_ref[...]
    y = jnp.where(y >= 0, y, slope * y)                # slope=1 -> identity, 0 -> ReLU
    o_ref[0] = y.astype(o_ref.dtype)


def matmul_fused(x, w, bias=None, scale=None, shift=None, slope=1.0,
                 out_dtype=BF16, tv_target=256, tcn_target=512):
    """Per-vertex channel transform (Conv1d kernel_size=1) with fused epilogue.

    bf16 storage / MXU inputs, f32 accumulation.  Grid = (B, V-tiles, Cout-tiles).
    """
    B, V, K = x.shape
    Cout = w.shape[1]
    tv = _tile_rows(V, tv_target)
    tcn = _tile_cols(Cout, tcn_target)
    x = x.astype(BF16)
    w = w.astype(BF16)
    bias = jnp.zeros((Cout,), F32) if bias is None else bias.astype(F32)
    scale = jnp.ones((Cout,), F32) if scale is None else scale.astype(F32)
    shift = jnp.zeros((Cout,), F32) if shift is None else shift.astype(F32)
    kern = functools.partial(_matmul_fused_kernel, slope=slope)
    return pl.pallas_call(
        kern,
        out_shape=jax.ShapeDtypeStruct((B, V, Cout), out_dtype),
        grid=(B, V // tv, Cout // tcn),
        in_specs=[
            pl.BlockSpec((1, tv, K), lambda b, vi, ci: (b, vi, 0)),
            pl.BlockSpec((K, tcn), lambda b, vi, ci: (0, ci)),
            pl.BlockSpec((1, tcn), lambda b, vi, ci: (0, ci)),
            pl.BlockSpec((1, tcn), lambda b, vi, ci: (0, ci)),
            pl.BlockSpec((1, tcn), lambda b, vi, ci: (0, ci)),
        ],
        out_specs=pl.BlockSpec((1, tv, tcn), lambda b, vi, ci: (b, vi, ci)),
        compiler_params=_cp(3),
    )(x, w, bias.reshape(1, Cout), scale.reshape(1, Cout), shift.reshape(1, Cout))


def _surface_agg_kernel(ndn_ref, dirs_ref, v_ref, wste_ref, o_ref):
    """HSlayer_surface: ReLU(dir.support) -> max over nbrs -> sum supports + STE, +ReLU."""
    k = o_ref.shape[2]
    n = ndn_ref.shape[2] // 3
    s = dirs_ref.shape[1] // k
    nd = ndn_ref[0]                                    # (tv, n*3) f32
    dirs = dirs_ref[...]                               # (3, s*k)  f32
    acc = None
    for i in range(n):                                 # static neighbor loop (VPU FMAs)
        th = (nd[:, 3 * i + 0:3 * i + 1] * dirs[0:1, :]
              + nd[:, 3 * i + 1:3 * i + 2] * dirs[1:2, :]
              + nd[:, 3 * i + 2:3 * i + 3] * dirs[2:3, :])
        th = jnp.maximum(th, 0.0)                      # (tv, s*k)
        acc = th if acc is None else jnp.maximum(acc, th)
    v = v_ref[0]                                       # (tv, 3) f32
    w = wste_ref[...]                                  # (3, k)  f32
    res = (v[:, 0:1] * w[0:1, :] + v[:, 1:2] * w[1:2, :] + v[:, 2:3] * w[2:3, :])
    for j in range(s):                                 # sum over supports
        res = res + acc[:, j * k:(j + 1) * k]
    o_ref[0] = jnp.maximum(res, 0.0).astype(o_ref.dtype)   # fused outer ReLU (fm_0)


def _hs_agg_kernel(ndn_ref, dirs_ref, idx_ref, comb_ref, add_ref, sc_ref, sh_ref,
                   o_ref, *, slope):
    """HS_layer: ReLU(theta) * in-kernel-gathered support feats -> max over nbrs ->
    sum supports + (center + STE), fused folded-BN + (Leaky)ReLU epilogue."""
    tv, n = idx_ref.shape[1], idx_ref.shape[2]
    V = comb_ref.shape[1]
    out_c = o_ref.shape[2]
    s = dirs_ref.shape[1] // out_c
    nd = ndn_ref[0]                                    # (tv, n*3)  f32
    dirs = dirs_ref[...]                               # (3, s*out) f32
    sup = comb_ref[0][:, out_c:]                       # (V, s*out) bf16 (full V, no HBM gather)
    idx = idx_ref[0]                                   # (tv, n)    int32 (global vertex ids)
    iota_v = jax.lax.broadcasted_iota(jnp.int32, (tv, V), 1)
    acc = None
    for i in range(n):                                 # static neighbor loop
        th = (nd[:, 3 * i + 0:3 * i + 1] * dirs[0:1, :]
              + nd[:, 3 * i + 1:3 * i + 2] * dirs[1:2, :]
              + nd[:, 3 * i + 2:3 * i + 3] * dirs[2:3, :])
        th = jnp.maximum(th, 0.0)                      # (tv, s*out) f32
        oh = (idx[:, i:i + 1] == iota_v).astype(sup.dtype)              # (tv, V)
        g = jnp.dot(oh, sup, preferred_element_type=F32)                # gather via MXU
        a = th * g
        acc = a if acc is None else jnp.maximum(acc, a)
    res = add_ref[0].astype(F32)                       # center + STE for this tile
    for j in range(s):
        res = res + acc[:, j * out_c:(j + 1) * out_c]
    y = res * sc_ref[...] + sh_ref[...]                # folded eval-mode BN
    y = jnp.where(y >= 0, y, slope * y)                # slope=0 ReLU, slope=1 identity
    o_ref[0] = y.astype(o_ref.dtype)


def _pool_max_kernel(idx_ref, fm_ref, o_ref):
    """Pool_layer: max over neighbor features, gathered in-kernel via one-hot matmul."""
    tp, n = idx_ref.shape[1], idx_ref.shape[2]
    V = fm_ref.shape[1]
    fm = fm_ref[0]                                     # (V, C) bf16
    idx = idx_ref[0]                                   # (tp, n) int32
    iota_v = jax.lax.broadcasted_iota(jnp.int32, (tp, V), 1)
    acc = None
    for i in range(n):
        oh = (idx[:, i:i + 1] == iota_v).astype(fm.dtype)
        g = jnp.dot(oh, fm, preferred_element_type=F32)    # exact row select
        acc = g if acc is None else jnp.maximum(acc, g)
    o_ref[0] = acc.astype(o_ref.dtype)


# ====================================================================================
# gcn3d glue (top-k / argmin / normalize stay in XLA) + layer compositions
# ====================================================================================
def f_normalize(x, axis, eps=1e-12):
    n = jnp.sqrt(jnp.sum(x * x, axis=axis, keepdims=True))
    return x / jnp.maximum(n, eps)


def gather_neighbors(x, idx):
    # x: (B, V, C), idx: (B, V1, n) -> (B, V1, n, C)   (== gcn3d.indexing_neighbor_new)
    return jax.vmap(lambda xb, ib: xb[ib])(x, idx)


def get_neighbor_index(vertices, neighbor_num):
    # TODO(synk): torch.topk(largest=False) tie-breaking may differ from lax.top_k on exact ties.
    # TODO(synk): top-k selection stays in XLA, so the (B,V,V) distance matrix still
    #             round-trips HBM; an in-kernel selection would remove it at large N.
    d = pairwise_sqdist(vertices, vertices)
    _, idx = jax.lax.top_k(-d, neighbor_num + 1)
    return idx[:, :, 1:]          # drop self


def get_nearest_index(target, source):
    d = pairwise_sqdist(target, source)
    return jnp.argmin(d, axis=-1)[..., None].astype(jnp.int32)


def neighbor_direction_norm_flat(vertices, idx):
    """Normalized neighbor directions flattened to (B, V, n*3) (lane-dense-ish layout)."""
    B, V, _ = vertices.shape
    n = idx.shape[2]
    neigh = gather_neighbors(vertices, idx)             # (B, V, n, 3)  (small: n*3 floats/vertex)
    ndn = f_normalize(neigh - vertices[:, :, None, :], axis=-1)
    return ndn.reshape(B, V, n * 3)


def surface_layer(p, vertices, neighbor_num):
    """gcn3d.HSlayer_surface + outer ReLU, fully fused in one kernel per (b, v-tile)."""
    B, V, _ = vertices.shape
    s, k = p["support_num"], p["kernel_num"]
    idx = get_neighbor_index(vertices, neighbor_num)
    ndn = neighbor_direction_norm_flat(vertices, idx)    # (B, V, n*3) f32
    dirs = f_normalize(p["directions"], axis=0)          # (3, s*k)   f32
    n3 = ndn.shape[2]
    tv = _tile_rows(V)
    return pl.pallas_call(
        _surface_agg_kernel,
        out_shape=jax.ShapeDtypeStruct((B, V, k), BF16),
        grid=(B, V // tv),
        in_specs=[
            pl.BlockSpec((1, tv, n3), lambda b, vi: (b, vi, 0)),
            pl.BlockSpec((3, s * k), lambda b, vi: (0, 0)),
            pl.BlockSpec((1, tv, 3), lambda b, vi: (b, vi, 0)),
            pl.BlockSpec((3, k), lambda b, vi: (0, 0)),
        ],
        out_specs=pl.BlockSpec((1, tv, k), lambda b, vi: (b, vi, 0)),
        compiler_params=_cp(2),
    )(ndn, dirs, vertices, p["w_ste"].astype(F32))


def hs_layer(p, vertices, feature_map, neighbor_num, bn_scale, bn_shift, slope):
    """gcn3d.HS_layer (+ folded BN + activation).  STE is folded into the center
    columns of the feature transform; support features are gathered in-kernel."""
    s, out_c = p["support_num"], p["out_channel"]
    B, V, _ = vertices.shape
    idx = get_neighbor_index(vertices, neighbor_num)          # (B, V, n) int32
    ndn = neighbor_direction_norm_flat(vertices, idx)         # (B, V, n*3) f32
    dirs = f_normalize(p["directions"], axis=0)               # (3, s*out) f32
    # fold STE into the center block:  center + STE = x @ (W[:, :out] + W_ste) + b[:out]
    w_comb = jnp.concatenate(
        [p["weights"][:, :out_c] + p["w_ste"], p["weights"][:, out_c:]], axis=1)
    comb = matmul_fused(feature_map, w_comb, bias=p["bias"])  # (B, V, (s+1)*out) bf16
    add = comb[:, :, :out_c]                                  # center + STE (small slice)

    n = idx.shape[2]
    tv = _tile_rows(V)
    if bn_scale is None:
        bn_scale = jnp.ones((out_c,), F32)
    if bn_shift is None:
        bn_shift = jnp.zeros((out_c,), F32)
    kern = functools.partial(_hs_agg_kernel, slope=slope)
    return pl.pallas_call(
        kern,
        out_shape=jax.ShapeDtypeStruct((B, V, out_c), BF16),
        grid=(B, V // tv),
        in_specs=[
            pl.BlockSpec((1, tv, n * 3), lambda b, vi: (b, vi, 0)),
            pl.BlockSpec((3, s * out_c), lambda b, vi: (0, 0)),
            pl.BlockSpec((1, tv, n), lambda b, vi: (b, vi, 0)),
            pl.BlockSpec((1, V, (s + 1) * out_c), lambda b, vi: (b, 0, 0)),   # full-V support
            pl.BlockSpec((1, tv, out_c), lambda b, vi: (b, vi, 0)),
            pl.BlockSpec((1, out_c), lambda b, vi: (0, 0)),
            pl.BlockSpec((1, out_c), lambda b, vi: (0, 0)),
        ],
        out_specs=pl.BlockSpec((1, tv, out_c), lambda b, vi: (b, vi, 0)),
        compiler_params=_cp(2),
    )(ndn, dirs.astype(F32), idx, comb, add,
      bn_scale.astype(F32).reshape(1, out_c), bn_shift.astype(F32).reshape(1, out_c))


def pool_max(idx_s, fm):
    B, P, n = idx_s.shape
    V, C = fm.shape[1], fm.shape[2]
    tp = _tile_rows(P)
    return pl.pallas_call(
        _pool_max_kernel,
        out_shape=jax.ShapeDtypeStruct((B, P, C), fm.dtype),
        grid=(B, P // tp),
        in_specs=[pl.BlockSpec((1, tp, n), lambda b, pi: (b, pi, 0)),
                  pl.BlockSpec((1, V, C), lambda b, pi: (b, 0, 0))],
        out_specs=pl.BlockSpec((1, tp, C), lambda b, pi: (b, pi, 0)),
        compiler_params=_cp(2),
    )(idx_s, fm)


def pool_layer(vertices, feature_map, pooling_rate, neighbor_num, key):
    """gcn3d.Pool_layer: neighbor max-pool then random vertex subsampling.
    (Subsample indices first, then pool only the kept vertices: same values.)"""
    B, V, _ = vertices.shape
    idx = get_neighbor_index(vertices, neighbor_num)          # (B, V, nn)
    pool_num = V // pooling_rate
    sample_idx = jax.random.permutation(key, V)[:pool_num]    # deterministic "randperm"
    v_pool = vertices[:, sample_idx, :]
    idx_s = idx[:, sample_idx, :]                             # (B, pool_num, nn)
    pooled = pool_max(idx_s, feature_map)                     # in-kernel gather + max
    return v_pool, pooled


# ====================================================================================
# Face_Enc forward
# ====================================================================================
def face_enc_forward(params, vertices, cat_id, enable_proj=False):
    B, N, _ = vertices.shape
    nn0 = params["gcn_n_num"]

    one_hot = jax.nn.one_hot(cat_id.reshape(-1), params["obj_c"], dtype=F32)   # (B, obj_c)

    fm_0 = surface_layer(params["conv_0"], vertices, nn0)                      # ReLU fused
    # TODO(synk): BN layers implemented in eval mode (folded running stats), not training-mode batch stats.
    fm_1 = hs_layer(params["conv_1"], vertices, fm_0, nn0,
                    params["bn1"]["scale"], params["bn1"]["shift"], slope=0.0)

    v_pool_1, fm_pool_1 = pool_layer(vertices, fm_1, 4, 4, params["pool1_key"])
    nn1 = min(nn0, v_pool_1.shape[1] // 8)
    fm_2 = hs_layer(params["conv_2"], v_pool_1, fm_pool_1, nn1,
                    params["bn2"]["scale"], params["bn2"]["shift"], slope=0.0)
    fm_3 = hs_layer(params["conv_3"], v_pool_1, fm_2, nn1,
                    params["bn3"]["scale"], params["bn3"]["shift"], slope=0.0)

    v_pool_2, fm_pool_2 = pool_layer(v_pool_1, fm_3, 4, 4, params["pool2_key"])
    nn2 = min(nn0, v_pool_2.shape[1] // 8)
    fm_4 = hs_layer(params["conv_4"], v_pool_2, fm_pool_2, nn2, None, None, slope=1.0)

    nearest_pool_1 = get_nearest_index(vertices, v_pool_1)     # (B, N, 1)
    nearest_pool_2 = get_nearest_index(vertices, v_pool_2)
    fm_2u = jnp.squeeze(gather_neighbors(fm_2, nearest_pool_1), axis=2)
    fm_3u = jnp.squeeze(gather_neighbors(fm_3, nearest_pool_1), axis=2)
    fm_4u = jnp.squeeze(gather_neighbors(fm_4, nearest_pool_2), axis=2)

    one_hot_rep = jnp.broadcast_to(one_hot[:, None, :], (B, N, params["obj_c"]))
    feat = jnp.concatenate(
        [fm_0.astype(F32), fm_1.astype(F32), fm_2u.astype(F32),
         fm_3u.astype(F32), fm_4u.astype(F32), one_hot_rep], axis=2)           # (B, N, 1286)

    if enable_proj:
        pr = params["proj"]
        C = feat.shape[2]                                     # 1286
        Cp = ((C + 127) // 128) * 128                         # 1408 (lane-aligned)
        pad = Cp - C
        feat_p = jnp.pad(feat, ((0, 0), (0, 0), (0, pad))).astype(BF16)
        w1p = jnp.pad(pr["w1"], ((0, pad), (0, pad)))
        w2p = jnp.pad(pr["w2"], ((0, pad), (0, pad)))
        scp = jnp.pad(pr["bn_scale"], (0, pad), constant_values=1.0)
        shp = jnp.pad(pr["bn_shift"], (0, pad))
        h = matmul_fused(feat_p, w1p, scale=scp, shift=shp, slope=0.2)   # Conv1d + BN + LeakyReLU
        out = matmul_fused(h, w2p)                                        # Conv1d (no bias)
        feat_global_prj = jnp.transpose(out[:, :, :C].astype(F32), (0, 2, 1))
    else:
        feat_global_prj = jnp.transpose(feat, (0, 2, 1))                  # (B, 1286, N)
    return feat, feat_global_prj


# ====================================================================================
# Deterministic parameter initialization (shapes follow the module __init__)
# ====================================================================================
def init_params(key):
    s = GCN_SUP_NUM
    keys = iter(jax.random.split(key, 64))

    def u(shape, fan):
        stdv = 1.0 / (float(fan) ** 0.5)
        return jax.random.uniform(next(keys), shape, F32, -stdv, stdv)

    def surface(kernel_num):
        return dict(support_num=s, kernel_num=kernel_num,
                    directions=u((3, s * kernel_num), s * kernel_num),
                    w_ste=u((3, kernel_num), 3))

    def hs(cin, cout):
        return dict(support_num=s, out_channel=cout,
                    weights=u((cin, (s + 1) * cout), (s + 1) * cout),
                    bias=u(((s + 1) * cout,), (s + 1) * cout),
                    directions=u((3, s * cout), (s + 1) * cout),
                    w_ste=u((cin, cout), cin))

    def bn(c):
        gamma = 1.0 + 0.1 * jax.random.normal(next(keys), (c,), F32)
        beta = 0.05 * jax.random.normal(next(keys), (c,), F32)
        scale = gamma / jnp.sqrt(1.0 + 1e-5)      # running_mean=0, running_var=1, eps=1e-5
        shift = beta
        return dict(scale=scale, shift=shift)

    bn_p = bn(1286)
    return dict(
        gcn_n_num=GCN_N_NUM, obj_c=OBJ_C,
        conv_0=surface(128),
        conv_1=hs(128, 128),
        conv_2=hs(128, 256),
        conv_3=hs(256, 256),
        conv_4=hs(256, 512),
        bn1=bn(128), bn2=bn(256), bn3=bn(256),
        proj=dict(w1=u((1286, 1286), 1286), w2=u((1286, 1286), 1286),
                  bn_scale=bn_p["scale"], bn_shift=bn_p["shift"]),
        pool1_key=jax.random.PRNGKey(1),
        pool2_key=jax.random.PRNGKey(2),
    )


if __name__ == "__main__":
    key = jax.random.PRNGKey(0)
    kp, kv, kc = jax.random.split(key, 3)

    B, N = 2, 128
    params = init_params(kp)
    vertices = jax.random.normal(kv, (B, N, 3), F32)           # [B, N, 3]
    cat_id = jax.random.randint(kc, (B, 1), 0, OBJ_C)          # [B, 1]

    feat, feat_global = face_enc_forward(params, vertices, cat_id, enable_proj=False)
    _, feat_global_prj = face_enc_forward(params, vertices, cat_id, enable_proj=True)
    jax.block_until_ready((feat, feat_global, feat_global_prj))

    assert feat.shape == (B, N, 1286)
    assert feat_global.shape == (B, 1286, N)
    assert feat_global_prj.shape == (B, 1286, N)
    assert bool(jnp.all(jnp.isfinite(feat)))
    assert bool(jnp.all(jnp.isfinite(feat_global_prj)))
    print("KERNEL_OK")
</pallas_src>

<mosaic_0001>
module attributes {stable_mosaic.version = 11 : i64} {
  func.func @_sqdist_kernel(%arg0: i32, %arg1: i32, %arg2: memref<1x128x3xf32, #tpu.memory_space<vmem>>, %arg3: memref<1x128x3xf32, #tpu.memory_space<vmem>>, %arg4: memref<1x1x128xf32, #tpu.memory_space<vmem>>, %arg5: memref<1x128x128xf32, #tpu.memory_space<vmem>>) attributes {dimension_semantics = [#tpu.dimension_semantics<parallel>, #tpu.dimension_semantics<parallel>], iteration_bounds = array<i64: 2, 1>, scalar_prefetch = 0 : i64, scratch_operands = 0 : i64, tpu.core_type = #tpu.core_type<tc>, window_params = [{transform_indices = @transform_0, window_bounds = array<i64: 1, 128, 3>}, {transform_indices = @transform_1, window_bounds = array<i64: 1, 128, 3>}, {transform_indices = @transform_2, window_bounds = array<i64: 1, 1, 128>}, {transform_indices = @transform_3, window_bounds = array<i64: 1, 128, 128>}]} {
    %c0 = arith.constant 0 : index
    %c0_0 = arith.constant 0 : index
    %c0_1 = arith.constant 0 : index
    %0 = vector.load %arg2[%c0, %c0_0, %c0_1] : memref<1x128x3xf32, #tpu.memory_space<vmem>>, vector<1x128x3xf32>
    %1 = vector.shape_cast %0 : vector<1x128x3xf32> to vector<128x3xf32>
    %c0_2 = arith.constant 0 : index
    %c0_3 = arith.constant 0 : index
    %c0_4 = arith.constant 0 : index
    %2 = vector.load %arg3[%c0_2, %c0_3, %c0_4] : memref<1x128x3xf32, #tpu.memory_space<vmem>>, vector<1x128x3xf32>
    %3 = vector.shape_cast %2 : vector<1x128x3xf32> to vector<128x3xf32>
    %cst = arith.constant dense<0.000000e+00> : vector<128x128xf32>
    %4 = tpu.matmul %1, %3, %cst {dimension_numbers = #tpu.dot_dimension_numbers<[1], [1], [0], [0], [0, 0, 1, 0], [], []>} : vector<128x3xf32>, vector<128x3xf32>, vector<128x128xf32> -> vector<128x128xf32>
    %5 = arith.mulf %1, %1 : vector<128x3xf32>
    %cst_5 = arith.constant dense<0.000000e+00> : vector<128xf32>
    %6 = vector.multi_reduction <add>, %5, %cst_5 [1] : vector<128x3xf32> to vector<128xf32>
    %7 = vector.shape_cast %6 : vector<128xf32> to vector<128x1xf32>
    %cst_6 = arith.constant 2.000000e+00 : f32
    %8 = vector.broadcast %cst_6 : f32 to vector<128x128xf32>
    %9 = arith.mulf %8, %4 : vector<128x128xf32>
    %10 = vector.broadcast %7 : vector<128x1xf32> to vector<128x128xf32>
    %11 = arith.subf %10, %9 : vector<128x128xf32>
    %c0_7 = arith.constant 0 : index
    %c0_8 = arith.constant 0 : index
    %c0_9 = arith.constant 0 : index
    %12 = vector.load %arg4[%c0_7, %c0_8, %c0_9] : memref<1x1x128xf32, #tpu.memory_space<vmem>>, vector<1x1x128xf32>
    %13 = vector.shape_cast %12 : vector<1x1x128xf32> to vector<1x128xf32>
    %14 = vector.broadcast %13 : vector<1x128xf32> to vector<128x128xf32>
    %15 = arith.addf %11, %14 : vector<128x128xf32>
    %c0_10 = arith.constant 0 : index
    %c0_11 = arith.constant 0 : index
    %c0_12 = arith.constant 0 : index
    %16 = vector.load %arg5[%c0_10, %c0_11, %c0_12] : memref<1x128x128xf32, #tpu.memory_space<vmem>>, vector<1x128x128xf32>
    %17 = vector.shape_cast %16 : vector<1x128x128xf32> to vector<128x128xf32>
    %18 = vector.shape_cast %15 : vector<128x128xf32> to vector<1x128x128xf32>
    tpu.vector_store %arg5[%c0_10, %c0_11, %c0_12], %18 {strides = array<i32>} : memref<1x128x128xf32, #tpu.memory_space<vmem>>, vector<1x128x128xf32>,
    return
  }
  func.func @transform_0(%arg0: i32, %arg1: i32) -> (i32, i32, i32) {
    %c0_i32 = arith.constant 0 : i32
    %c0_i32_0 = arith.constant 0 : i32
    return %arg0, %arg1, %c0_i32 : i32, i32, i32
  }
  func.func @transform_1(%arg0: i32, %arg1: i32) -> (i32, i32, i32) {
    %c0_i32 = arith.constant 0 : i32
    %c0_i32_0 = arith.constant 0 : i32
    %c0_i32_1 = arith.constant 0 : i32
    return %arg0, %c0_i32, %c0_i32_0 : i32, i32, i32
  }
  func.func @transform_2(%arg0: i32, %arg1: i32) -> (i32, i32, i32) {
    %c0_i32 = arith.constant 0 : i32
    %c0_i32_0 = arith.constant 0 : i32
    %c0_i32_1 = arith.constant 0 : i32
    return %arg0, %c0_i32, %c0_i32_0 : i32, i32, i32
  }
  func.func @transform_3(%arg0: i32, %arg1: i32) -> (i32, i32, i32) {
    %c0_i32 = arith.constant 0 : i32
    %c0_i32_0 = arith.constant 0 : i32
    return %arg0, %arg1, %c0_i32 : i32, i32, i32
  }
}

</mosaic_0001>

<bundles_post_ra>
// kernel: tpu_custom_call.1
= control target key start
LH: loop header
LB: loop body
LE: loop exit
PB: predicated region body
PF: predicated region fallthrough
CT: control target
= control target key end

     0   :  { %8 = vsyncpa [#allocation3], 0  ;;  %s1462_s0 = inlined_call_operand.vmem [shape: f32[2,128,3], index: 0, kind: input, shape index: {}]   ;;  %s1463_s1 = inlined_call_operand.vmem [shape: f32[2,128,3], index: 1, kind: input, shape index: {}]   ;;  %s1464_s2 = inlined_call_operand.vmem [shape: f32[2,1,128], index: 2, kind: input, shape index: {}]   ;;  %s1465_s3 = inlined_call_operand.hbm [shape: f32[2,128,128], index: 3, kind: output, shape index: {}]  }
   0x1   :  { %10 = vsyncpa [#allocation3 + $0x1], 0  ;;  %s1088_s12 = smov 0   ;;  %s1090_s13 = smov 0  }
   0x2   :  { %s1092_s14 = smov 0   ;;  %s1094_s15 = smov 0  }
   0x3   :  { %s1096_s16 = smov 0   ;;  %s1098_s17 = smov 0  }
   0x4 LB: > { %s759_s18 = sadd.s32 4294967295, %s1063_s17   ;;  %s760_s19 = sadd.s32 4294967294, %s1063_s17   ;;  %s1063_s17 = sphi %s1098_s17, %s16_s17   ;;  %s1059_s16 = sphi %s1096_s16, %s1472_s16   ;;  %s1055_s15 = sphi %s1094_s15, %s1471_s15   ;;  %s1051_s14 = sphi %s1092_s14, %s1470_s14   ;;  %s1047_s13 = sphi %s1090_s13, %s1469_s13   ;;  %s1043_s12 = sphi %s1088_s12, %s1468_s12  }
   0x5   : > { %s28_s20 = sadd.s32 1, %s1059_s16  ;;  %s117_s21 = sadd.s32 1, %s1051_s14 }
   0x6   : > { %p30_p0 = scmp.ge.s32.totalorder %s28_s20, 2  ;;  %p127_p1 = scmp.ne.s32.totalorder %s1051_s14, %s1047_s13 }
   0x7   : > { %p128_p2 = scmp.eq.s32.totalorder %s759_s18, 1  ;;  %p133_p3 = scmp.ne.s32.totalorder %s1047_s13, %s1043_s12 }
   0x8   : > { %s1474_s20 = smov (%p30_p0, %s28_s20), 0  ;;  %p134_p5 = scmp.eq.s32.totalorder %s760_s19, 1 }
   0x9   : > { %p1128_p4 = por %p128_p2, %p127_p1  ;;  %s112_s23 = ssub.s32 %s1059_s16, %s1474_s20 }
   0xa   : > { %p763_p6 = scmp.ge.s32.totalorder %s1063_s17, 1  ;;  %p115_p7 = scmp.eq.s32.totalorder %s112_s23, 0 }
   0xb   : > { %p1135_p8 = por %p134_p5, %p133_p3  ;;  %p179_p9 = scmp.lt.s32.totalorder %s1063_s17, 3 }
   0xc   : > { %s1141_s25 = scalar_select %p115_p7, %s1051_s14, %s117_s21  }
   0xd   : > { %p180_p10 = pnand %p763_p6, %p179_p9 }
   0xe   : > { %p216_p11 = scmp.lt.s32.totalorder (!%p180_p10), %s1055_s15, 1  ;;  %s212_s7 = sand.u32 (!%p180_p10), 1, %s1047_s13  }
   0xf   : > { %183 = sbr.rel (%p180_p10) target bundleno = 317 (0x13d), region = 32  ;;  %s764_s11 = sshll.u32 (!%p180_p10), %s212_s7, 7 }
  0x10   : > { %s1370_s18 = scalar_lea.vmem (!%p180_p10), [#allocation2], %s764_s11  ;;  %s809_s19 = sshll.u32 (!%p180_p10), %s1055_s15, 11 }
  0x11   : > { %s659_s21 = sshll.u32 (!%p180_p10), %s1370_s18, 4  ;;  %s1065_s29 = smov (!%p180_p10), [#allocation2]   ;;  %s1410_s21 = int_to_ptr.vmem [resolvable:$true] %s659_s21 }
  0x12   : > { %s987_s28 = scalar_lea.vmem (!%p180_p10), %s1410_s21, 2048 }
  0x13   : > { %p988_p12 = scmp.ne.s32.totalorder (!%p180_p10), %s1410_s21, %s987_s28 }
  0x14   : > { %s1145_s26 = scalar_select %p216_p11, %s1055_s15, 1  ;;  %vm266_vm0 = vcmask 23552  }
  0x15   : > { %s1408_s15 = scalar_lea.hbm %s1465_s3, %s809_s19  ;;  %p989_p13 = pnand %p988_p12, %p1128_p4 }
  0x16   : > { %s807_s27 = sshll.u32 %s1145_s26, 7  ;;  %s232_s10 = scalar_lea.vmem %s1464_s2, %s1145_s26 }
  0x17   : > { %s1151_s30 = scalar_lea.vmem %s1463_s1, %s807_s27  ;;  %s1162_s6 = scalar_lea.vmem %s1462_s0, %s807_s27 }
  0x18   : > { %v265_v0 = vld [vmem:[%s1151_s30 + $0x78] sm:$0xff]  ;;  %v264_v1 = vld [vmem:[%s1151_s30 + $0x70] sm:$0xff]  ;;  %v263_v2 = vld [vmem:[%s1151_s30 + $0x68] sm:$0xff]  ;;  %s1417_s27 = scalar_lea.sflag [#allocation3], %s212_s7  ;;  %p990_p0 = pneg %p989_p13 }
  0x19   : > { %842 = vmatprep.subr.msk.mxu0 %vm266_vm0, %v265_v0  ;;  %898 = vmatprep.subr.msk.mxu1 %vm266_vm0, %v265_v0  ;;  %v234_v3 = vld [vmem:[%s1162_s6] sm:$0xff]  ;;  %v1172_v6 = vld [vmem:[%s1162_s6 + $0x8] sm:$0xff]  ;;  %v1175_v7 = vld [vmem:[%s1162_s6 + $0x10] sm:$0xff] }
  0x1a   : > { %843 = vmatpush3.xpose.msk.msra.mxu0 %vm266_vm0, %v265_v0  ;;  %914 = vmatpush3.xpose.msk.msra.mxu1 %vm266_vm0, %v265_v0  ;;  %v242_v4 = vld [vmem:[%s1162_s6 + $0x40] sm:$0xff]  ;;  %v508_v5 = vmul.f32 %v234_v3, %v234_v3  ;;  %v510_v8 = vmul.f32 %v1175_v7, %v1175_v7  ;;  %v509_v9 = vmul.f32 %v1172_v6, %v1172_v6  ;;  %v1187_v11 = vld [vmem:[%s1162_s6 + $0x18] sm:$0xff]  ;;  %v1205_v19 = vld [vmem:[%s1162_s6 + $0x28] sm:$0xff] }
  0x1b   : > { %844 = vmatprep.subr.msk.mxu0 %vm266_vm0, %v264_v1  ;;  %899 = vmatprep.subr.msk.mxu1 %vm266_vm0, %v264_v1  ;;  %v262_v10 = vld [vmem:[%s1151_s30 + $0x60] sm:$0xff]  ;;  %v511_v15 = vmul.f32 %v1187_v11, %v1187_v11  ;;  %v261_v18 = vld [vmem:[%s1151_s30 + $0x58] sm:$0xff]  ;;  %v1208_v20 = vld [vmem:[%s1162_s6 + $0x30] sm:$0xff]  ;;  %v513_v22 = vmul.f32 %v1205_v19, %v1205_v19  ;;  %v516_v29 = vmul.f32 %v242_v4, %v242_v4 }
  0x1c   : > { %874 = vmatprep.mubr.msk.f32.mxu0 %vm266_vm0, %v234_v3  ;;  %886 = vmatprep.mubr.msk.f32.mxu1 %vm266_vm0, %v242_v4  ;;  %v524_v12 = vsel %vm266_vm0, %v508_v5, 0.0  ;;  %v1191_v13 = vld [vmem:[%s1162_s6 + $0x20] sm:$0xff]  ;;  %v530_v14 = vsel %vm266_vm0, %v510_v8, 0.0  ;;  %v527_v16 = vsel %vm266_vm0, %v509_v9, 0.0  ;;  %v514_v24 = vmul.f32 %v1208_v20, %v1208_v20  ;;  %v260_v25 = vld [vmem:[%s1151_s30 + $0x50] sm:$0xff]  ;;  %v1222_v26 = vld [vmem:[%s1162_s6 + $0x38] sm:$0xff] }
  0x1d   : > { %525 = vadd.xlane.f32.xlu0 %v524_v12  ;;  %v512_v17 = vmul.f32 %v1191_v13, %v1191_v13  ;;  %531 = vadd.xlane.f32.xlu1 %v530_v14  ;;  %v533_v21 = vsel %vm266_vm0, %v511_v15, 0.0  ;;  %v539_v27 = vsel %vm266_vm0, %v513_v22, 0.0  ;;  %v515_v28 = vmul.f32 %v1222_v26, %v1222_v26  ;;  %v259_v31 = vld [vmem:[%s1151_s30 + $0x48] sm:$0xff]  ;;  %v1237_v33 = vld [vmem:[%s1162_s6 + $0x50] sm:$0xff]  ;;  %v258_v38 = vld [vmem:[%s1151_s30 + $0x40] sm:$0xff] }
  0x1e   : > { %845 = vmatpush3.xpose.msk.msra.mxu0 %vm266_vm0, %v264_v1  ;;  %915 = vmatpush3.xpose.msk.msra.mxu1 %vm266_vm0, %v264_v1  ;;  %v542_v30 = vsel %vm266_vm0, %v514_v24, 0.0  ;;  %v1234_v32 = vld [vmem:[%s1162_s6 + $0x48] sm:$0xff]  ;;  %v548_v36 = vsel %vm266_vm0, %v516_v29, 0.0  ;;  %v518_v37 = vmul.f32 %v1237_v33, %v1237_v33  ;;  %v1251_v39 = vld [vmem:[%s1162_s6 + $0x58] sm:$0xff]  ;;  %v1254_v40 = vld [vmem:[%s1162_s6 + $0x60] sm:$0xff] }
  0x1f   : > { %846 = vmatprep.subr.msk.mxu0 %vm266_vm0, %v263_v2  ;;  %900 = vmatprep.subr.msk.mxu1 %vm266_vm0, %v263_v2  ;;  %v536_v23 = vsel %vm266_vm0, %v512_v17, 0.0  ;;  %v545_v34 = vsel %vm266_vm0, %v515_v28, 0.0  ;;  %v517_v35 = vmul.f32 %v1234_v32, %v1234_v32  ;;  %v519_v42 = vmul.f32 %v1251_v39, %v1251_v39  ;;  %v257_v45 = vld [vmem:[%s1151_s30 + $0x38] sm:$0xff]  ;;  %v1268_v46 = vld [vmem:[%s1162_s6 + $0x68] sm:$0xff]  ;;  %v1271_v47 = vld [vmem:[%s1162_s6 + $0x70] sm:$0xff] }
  0x20   : > { %v554_v43 = vsel %vm266_vm0, %v518_v37, 0.0  ;;  %v520_v44 = vmul.f32 %v1254_v40, %v1254_v40  ;;  %v521_v49 = vmul.f32 %v1268_v46, %v1268_v46  ;;  %v522_v51 = vmul.f32 %v1271_v47, %v1271_v47  ;;  %v256_v52 = vld [vmem:[%s1151_s30 + $0x30] sm:$0xff]  ;;  %v249_v53 = vld [vmem:[%s1162_s6 + $0x78] sm:$0xff]  ;;  %v255_v57 = vld [vmem:[%s1151_s30 + $0x28] sm:$0xff] }
  0x21   : > { %528 = vadd.xlane.f32.xlu0 %v527_v16  ;;  %534 = vadd.xlane.f32.xlu1 %v533_v21  ;;  %v551_v41 = vsel %vm266_vm0, %v517_v35, 0.0  ;;  %v557_v48 = vsel %vm266_vm0, %v519_v42, 0.0  ;;  %v523_v55 = vmul.f32 %v249_v53, %v249_v53  ;;  %v254_v59 = vld [vmem:[%s1151_s30 + $0x20] sm:$0xff]  ;;  %v253_v60 = vld [vmem:[%s1151_s30 + $0x18] sm:$0xff]  ;;  %v252_v61 = vld [vmem:[%s1151_s30 + $0x10] sm:$0xff] }
  0x22   : > { %847 = vmatpush3.xpose.msk.msra.mxu0 %vm266_vm0, %v263_v2  ;;  %916 = vmatpush3.xpose.msk.msra.mxu1 %vm266_vm0, %v263_v2  ;;  %v560_v50 = vsel %vm266_vm0, %v520_v44, 0.0  ;;  %v563_v54 = vsel %vm266_vm0, %v521_v49, 0.0  ;;  %v566_v56 = vsel %vm266_vm0, %v522_v51, 0.0  ;;  %v251_v62 = vld [vmem:[%s1151_s30 + $0x8] sm:$0xff]  ;;  %v250_v63 = vld [vmem:[%s1151_s30] sm:$0xff]  ;;  %s991_s30 = sshll.u32 %s1065_s29, 4  ;;  %s992_s30 = int_to_ptr.vmem [resolvable:$false] %s991_s30 }
  0x23   : > { %848 = vmatprep.subr.msk.mxu0 %vm266_vm0, %v262_v10  ;;  %901 = vmatprep.subr.msk.mxu1 %vm266_vm0, %v262_v10  ;;  %v569_v58 = vsel %vm266_vm0, %v523_v55, 0.0  ;;  %v1366_v16 = vld [vmem:[%s232_s10] ss:$0 sm:$0xff]  ;;  %s993_s4 = scalar_lea.vmem %s992_s30, 4096  ;;  %p994_p1 = scmp.lt.s32.totalorder %s1410_s21, %s992_s30 }
  0x24   : > { %p995_p2 = scmp.lt.s32.totalorder %s993_s4, %s987_s28 }
  0x25   : > { %537 = vadd.xlane.f32.xlu0 %v536_v23  ;;  %540 = vadd.xlane.f32.xlu1 %v539_v27 }
  0x26   : > { %849 = vmatpush3.xpose.msk.msra.mxu0 %vm266_vm0, %v262_v10  ;;  %917 = vmatpush3.xpose.msk.msra.mxu1 %vm266_vm0, %v262_v10  ;;  %p996_p3 = por %p995_p2, %p994_p1 }
  0x27   : > { %850 = vmatprep.subr.msk.mxu0 %vm266_vm0, %v261_v18  ;;  %902 = vmatprep.subr.msk.mxu1 %vm266_vm0, %v261_v18 }
  0x28   : > { %p997_p5 = pnand %p996_p3, %p990_p0 }
  0x29   : > { %543 = vadd.xlane.f32.xlu0 %v542_v30  ;;  %546 = vadd.xlane.f32.xlu1 %v545_v34 }
  0x2a   : > { %851 = vmatpush3.xpose.msk.msra.mxu0 %vm266_vm0, %v261_v18  ;;  %918 = vmatpush3.xpose.msk.msra.mxu1 %vm266_vm0, %v261_v18 }
  0x2b   : > { %852 = vmatprep.subr.msk.mxu0 %vm266_vm0, %v260_v25  ;;  %903 = vmatprep.subr.msk.mxu1 %vm266_vm0, %v260_v25 }
  0x2d   : > { %549 = vadd.xlane.f32.xlu0 %v548_v36  ;;  %552 = vadd.xlane.f32.xlu1 %v551_v41 }
  0x2e   : > { %853 = vmatpush3.xpose.msk.msra.mxu0 %vm266_vm0, %v260_v25  ;;  %919 = vmatpush3.xpose.msk.msra.mxu1 %vm266_vm0, %v260_v25 }
  0x2f   : > { %854 = vmatprep.subr.msk.mxu0 %vm266_vm0, %v259_v31  ;;  %904 = vmatprep.subr.msk.mxu1 %vm266_vm0, %v259_v31 }
  0x31   : > { %555 = vadd.xlane.f32.xlu0 %v554_v43  ;;  %558 = vadd.xlane.f32.xlu1 %v557_v48 }
  0x32   : > { %855 = vmatpush3.xpose.msk.msra.mxu0 %vm266_vm0, %v259_v31  ;;  %920 = vmatpush3.xpose.msk.msra.mxu1 %vm266_vm0, %v259_v31 }
  0x33   : > { %856 = vmatprep.subr.msk.mxu0 %vm266_vm0, %v258_v38  ;;  %905 = vmatprep.subr.msk.mxu1 %vm266_vm0, %v258_v38 }
  0x35   : > { %561 = vadd.xlane.f32.xlu0 %v560_v50  ;;  %564 = vadd.xlane.f32.xlu1 %v563_v54 }
  0x36   : > { %857 = vmatpush3.xpose.msk.msra.mxu0 %vm266_vm0, %v258_v38  ;;  %921 = vmatpush3.xpose.msk.msra.mxu1 %vm266_vm0, %v258_v38 }
  0x37   : > { %858 = vmatprep.subr.msk.mxu0 %vm266_vm0, %v257_v45  ;;  %906 = vmatprep.subr.msk.mxu1 %vm266_vm0, %v257_v45 }
  0x39   : > { %567 = vadd.xlane.f32.xlu0 %v566_v56  ;;  %570 = vadd.xlane.f32.xlu1 %v569_v58 }
  0x3a   : > { %859 = vmatpush3.xpose.msk.msra.mxu0 %vm266_vm0, %v257_v45  ;;  %922 = vmatpush3.xpose.msk.msra.mxu1 %vm266_vm0, %v257_v45 }
  0x3b   : > { %860 = vmatprep.subr.msk.mxu0 %vm266_vm0, %v256_v52  ;;  %907 = vmatprep.subr.msk.mxu1 %vm266_vm0, %v256_v52 }
  0x3e   : > { %861 = vmatpush3.xpose.msk.msra.mxu0 %vm266_vm0, %v256_v52  ;;  %923 = vmatpush3.xpose.msk.msra.mxu1 %vm266_vm0, %v256_v52 }
  0x3f   : > { %862 = vmatprep.subr.msk.mxu0 %vm266_vm0, %v255_v57  ;;  %908 = vmatprep.subr.msk.mxu1 %vm266_vm0, %v255_v57 }
  0x42   : > { %863 = vmatpush3.xpose.msk.msra.mxu0 %vm266_vm0, %v255_v57  ;;  %924 = vmatpush3.xpose.msk.msra.mxu1 %vm266_vm0, %v255_v57 }
  0x43   : > { %864 = vmatprep.subr.msk.mxu0 %vm266_vm0, %v254_v59  ;;  %909 = vmatprep.subr.msk.mxu1 %vm266_vm0, %v254_v59 }
  0x46   : > { %865 = vmatpush3.xpose.msk.msra.mxu0 %vm266_vm0, %v254_v59  ;;  %925 = vmatpush3.xpose.msk.msra.mxu1 %vm266_vm0, %v254_v59 }
  0x47   : > { %866 = vmatprep.subr.msk.mxu0 %vm266_vm0, %v253_v60  ;;  %910 = vmatprep.subr.msk.mxu1 %vm266_vm0, %v253_v60 }
  0x4a   : > { %867 = vmatpush3.xpose.msk.msra.mxu0 %vm266_vm0, %v253_v60  ;;  %926 = vmatpush3.xpose.msk.msra.mxu1 %vm266_vm0, %v253_v60 }
  0x4b   : > { %868 = vmatprep.subr.msk.mxu0 %vm266_vm0, %v252_v61  ;;  %911 = vmatprep.subr.msk.mxu1 %vm266_vm0, %v252_v61 }
  0x4e   : > { %869 = vmatpush3.xpose.msk.msra.mxu0 %vm266_vm0, %v252_v61  ;;  %927 = vmatpush3.xpose.msk.msra.mxu1 %vm266_vm0, %v252_v61 }
  0x4f   : > { %870 = vmatprep.subr.msk.mxu0 %vm266_vm0, %v251_v62  ;;  %912 = vmatprep.subr.msk.mxu1 %vm266_vm0, %v251_v62 }
  0x52   : > { %871 = vmatpush3.xpose.msk.msra.mxu0 %vm266_vm0, %v251_v62  ;;  %928 = vmatpush3.xpose.msk.msra.mxu1 %vm266_vm0, %v251_v62 }
  0x53   : > { %872 = vmatprep.subr.msk.mxu0 %vm266_vm0, %v250_v63  ;;  %913 = vmatprep.subr.msk.mxu1 %vm266_vm0, %v250_v63 }
  0x56   : > { %873 = vmatpush3.xpose.msk.msra.mxu0 %vm266_vm0, %v250_v63  ;;  %929 = vmatpush3.xpose.msk.msra.mxu1 %vm266_vm0, %v250_v63 }
  0x59   : > { %875 = vmatmul.mubr.msk.f32.vlgmr.msra.gmra.mxu0 %vm266_vm0, %v1172_v6  ;;  %887 = vmatmul.mubr.msk.f32.vlgmr.msra.gmra.mxu1 %vm266_vm0, %v1234_v32 }
  0x5a   : > { %877 = vmatprep.mubr.msk.f32.mxu0 %vm266_vm0, %v1175_v7  ;;  %889 = vmatprep.mubr.msk.f32.mxu1 %vm266_vm0, %v1237_v33 }
  0x5d   : > { %878 = vmatmul.mubr.msk.f32.gmra.mxu0 %vm266_vm0, %v1187_v11  ;;  %890 = vmatmul.mubr.msk.f32.gmra.mxu1 %vm266_vm0, %v1251_v39 }
  0x5e   : > { %880 = vmatprep.mubr.msk.f32.mxu0 %vm266_vm0, %v1191_v13  ;;  %892 = vmatprep.mubr.msk.f32.mxu1 %vm266_vm0, %v1254_v40 }
  0x61   : > { %881 = vmatmul.mubr.msk.f32.gmra.mxu0 %vm266_vm0, %v1205_v19  ;;  %893 = vmatmul.mubr.msk.f32.gmra.mxu1 %vm266_vm0, %v1268_v46 }
  0x62   : > { %883 = vmatprep.mubr.msk.f32.mxu0 %vm266_vm0, %v1208_v20  ;;  %895 = vmatprep.mubr.msk.f32.mxu1 %vm266_vm0, %v1271_v47 }
  0x65   : > { %884 = vmatmul.mubr.msk.f32.gmra.mxu0 %vm266_vm0, %v1222_v26  ;;  %896 = vmatmul.mubr.msk.f32.gmra.mxu1 %vm266_vm0, %v249_v53 }
  0xa6   : > { %v532_v0 = vpop.xlane.xlu1 %531  ;;  %v526_v1 = vpop.xlane.xlu0 %525 }
  0xaa   : > { %v535_v2 = vpop.xlane.xlu1 %534  ;;  %v529_v3 = vpop.xlane.xlu0 %528 }
  0xae   : > { %v1351_v4 = vpop.xlane.xlu1 %540  ;;  %v1353_v5 = vpop.xlane.xlu0 %537 }
  0xb2   : > { %v1355_v6 = vpop.xlane.xlu1 %546  ;;  %v1357_v7 = vpop.xlane.xlu0 %543 }
  0xb6   : > { %v553_v8 = vpop.xlane.xlu1 %552  ;;  %v550_v9 = vpop.xlane.xlu0 %549 }
  0xba   : > { %v559_v10 = vpop.xlane.xlu1 %558  ;;  %v556_v15 = vpop.xlane.xlu0 %555 }
  0xbe   : > { %v565_v29 = vpop.xlane.xlu1 %564  ;;  %v562_v38 = vpop.xlane.xlu0 %561 }
  0xc2   : > { %v571_v55 = vpop.xlane.xlu1 %570 }
 0x119   : > { %v888_v11 = vpop.f32.mrf.mxu1  ;;  %v876_v12 = vpop.f32.mrf.mxu0 }
 0x11a   : > { %v581_v13 = vmul.f32 2.0, %v888_v11  ;;  %v573_v14 = vmul.f32 2.0, %v876_v12 }
 0x11b   : > { %v469_v17 = vpop.f32.mrf.mxu1  ;;  %v429_v18 = vpop.f32.mrf.mxu0 }
 0x11c   : > { %v589_v19 = vsub.f32 %v529_v3, %v573_v14  ;;  %v580_v20 = vmul.f32 2.0, %v469_v17  ;;  %v597_v21 = vsub.f32 %v553_v8, %v581_v13  ;;  %v572_v22 = vmul.f32 2.0, %v429_v18 }
 0x11d   : > { %v891_v23 = vpop.f32.mrf.mxu1  ;;  %v879_v24 = vpop.f32.mrf.mxu0 }
 0x11e   : > { %v612_v25 = vadd.f32 %v1366_v16, %v589_v19  ;;  %v620_v26 = vadd.f32 %v1366_v16, %v597_v21  ;;  %v588_v27 = vsub.f32 %v526_v1, %v572_v22  ;;  %v583_v28 = vmul.f32 2.0, %v891_v23 }
 0x11f   : > { %v596_v30 = vsub.f32 %v550_v9, %v580_v20  ;;  %v575_v31 = vmul.f32 2.0, %v879_v24  ;;  %v479_v32 = vpop.f32.mrf.mxu1  ;;  %v439_v33 = vpop.f32.mrf.mxu0 }
 0x120   : > { %628 = vst [vmem:[%s1370_s18 + $0x8] sm:$0xff] %v612_v25  ;;  %636 = vst [vmem:[%s1370_s18 + $0x48] sm:$0xff] %v620_v26  ;;  %v611_v34 = vadd.f32 %v1366_v16, %v588_v27  ;;  %v582_v35 = vmul.f32 2.0, %v479_v32  ;;  %v599_v36 = vsub.f32 %v559_v10, %v583_v28  ;;  %v574_v37 = vmul.f32 2.0, %v439_v33 }
 0x121   : > { %v619_v39 = vadd.f32 %v1366_v16, %v596_v30  ;;  %v591_v40 = vsub.f32 %v535_v2, %v575_v31  ;;  %v894_v41 = vpop.f32.mrf.mxu1  ;;  %v882_v42 = vpop.f32.mrf.mxu0 }
 0x122   : > { %627 = vst [vmem:[%s1370_s18] sm:$0xff] %v611_v34  ;;  %v622_v43 = vadd.f32 %v1366_v16, %v599_v36  ;;  %v590_v44 = vsub.f32 %v532_v0, %v574_v37  ;;  %v585_v45 = vmul.f32 2.0, %v894_v41  ;;  %v598_v46 = vsub.f32 %v556_v15, %v582_v35  ;;  %v568_v0 = vpop.xlane.xlu0 %567 }
 0x123   : > { %635 = vst [vmem:[%s1370_s18 + $0x40] sm:$0xff] %v619_v39  ;;  %v614_v47 = vadd.f32 %v1366_v16, %v591_v40  ;;  %v577_v48 = vmul.f32 2.0, %v882_v42  ;;  %v489_v49 = vpop.f32.mrf.mxu1  ;;  %v449_v50 = vpop.f32.mrf.mxu0 }
 0x124   : > { %638 = vst [vmem:[%s1370_s18 + $0x58] sm:$0xff] %v622_v43  ;;  %v613_v51 = vadd.f32 %v1366_v16, %v590_v44  ;;  %v621_v52 = vadd.f32 %v1366_v16, %v598_v46  ;;  %v584_v53 = vmul.f32 2.0, %v489_v49  ;;  %v601_v54 = vsub.f32 %v565_v29, %v585_v45 }
 0x125   : > { %630 = vst [vmem:[%s1370_s18 + $0x18] sm:$0xff] %v614_v47  ;;  %v593_v56 = vsub.f32 %v1351_v4, %v577_v48  ;;  %v576_v57 = vmul.f32 2.0, %v449_v50  ;;  %v897_v58 = vpop.f32.mrf.mxu1  ;;  %v885_v59 = vpop.f32.mrf.mxu0 }
 0x126   : > { %629 = vst [vmem:[%s1370_s18 + $0x10] sm:$0xff] %v613_v51  ;;  %637 = vst [vmem:[%s1370_s18 + $0x50] sm:$0xff] %v621_v52  ;;  %v624_v60 = vadd.f32 %v1366_v16, %v601_v54  ;;  %v587_v61 = vmul.f32 2.0, %v897_v58  ;;  %v600_v62 = vsub.f32 %v562_v38, %v584_v53  ;;  %v579_v63 = vmul.f32 2.0, %v885_v59 }
 0x127   : > { %v616_v1 = vadd.f32 %v1366_v16, %v593_v56  ;;  %v592_v2 = vsub.f32 %v1353_v5, %v576_v57  ;;  %v499_v3 = vpop.f32.mrf.mxu1  ;;  %v459_v4 = vpop.f32.mrf.mxu0 }
 0x128   : > { %640 = vst [vmem:[%s1370_s18 + $0x68] sm:$0xff] %v624_v60  ;;  %v623_v8 = vadd.f32 %v1366_v16, %v600_v62  ;;  %v595_v9 = vsub.f32 %v1355_v6, %v579_v63  ;;  %v586_v10 = vmul.f32 2.0, %v499_v3  ;;  %v603_v11 = vsub.f32 %v571_v55, %v587_v61 }
 0x129   : > { %632 = vst [vmem:[%s1370_s18 + $0x28] sm:$0xff] %v616_v1  ;;  %v615_v12 = vadd.f32 %v1366_v16, %v592_v2  ;;  %v578_v13 = vmul.f32 2.0, %v459_v4 }
 0x12a   : > { %639 = vst [vmem:[%s1370_s18 + $0x60] sm:$0xff] %v623_v8  ;;  %v618_v5 = vadd.f32 %v1366_v16, %v595_v9  ;;  %v626_v14 = vadd.f32 %v1366_v16, %v603_v11  ;;  %v602_v15 = vsub.f32 %v568_v0, %v586_v10 }
 0x12b   : > { %631 = vst [vmem:[%s1370_s18 + $0x20] sm:$0xff] %v615_v12  ;;  %v594_v6 = vsub.f32 %v1357_v7, %v578_v13 }
 0x12c   : > { %634 = vst [vmem:[%s1370_s18 + $0x38] sm:$0xff] %v618_v5  ;;  %642 = vst [vmem:[%s1370_s18 + $0x78] sm:$0xff] %v626_v14  ;;  %v625_v17 = vadd.f32 %v1366_v16, %v602_v15 }
 0x12d   : > { %v617_v18 = vadd.f32 %v1366_v16, %v594_v6 }
 0x12e   : > { %641 = vst [vmem:[%s1370_s18 + $0x70] sm:$0xff] %v625_v17 }
 0x12f   : > { %633 = vst [vmem:[%s1370_s18 + $0x30] sm:$0xff] %v617_v18 }
 0x130   : > { %1000 = shalt.err (!%p997_p5)
}
 0x131   : > { %s1001_s5 = scalar_lea.hbm %s1408_s15, 2048  ;;  %s1005_s8 = scalar_lea.hbm %s1465_s3, 4096 }
 0x132   : > { %p1002_p6 = scmp.ne.s32.totalorder %s1408_s15, %s1001_s5  ;;  %p1006_p10 = scmp.lt.s32.totalorder %s1408_s15, %s1465_s3 }
 0x133   : > { %p1007_p11 = scmp.lt.s32.totalorder %s1005_s8, %s1001_s5 }
 0x134   : > { %p1003_p7 = pnand %p1002_p6, %p1128_p4 }
 0x135   : > { %p1008_p12 = por %p1007_p11, %p1006_p10 }
 0x136   : > { %p1004_p9 = pneg %p1003_p7 }
 0x138   : > { %p1009_p13 = pnand %p1008_p12, %p1004_p9 }
 0x13a   : > { %1012 = shalt.err (!%p1009_p13)
}
 0x13b   : > { %s1066_s11 = smov 128   ;;  %s1067_s18 = smov 8  }
 0x13c   : > { %930 = dma.vmem_to_hbm [thread:$0]  (%p1128_p4), %s1410_s21, 2048, %s1408_s15, %s1417_s27, %s1066_s11, %s1066_s11, %s1067_s18  }
 0x13d PF: > { %p936_p0 = scmp.ge.s32.totalorder %s1063_s17, 2  ;;  %s674_s19 = sand.u32 1, %s1043_s12  }
 0x13e   : > { %s675_s23 = scalar_lea.sflag [#allocation3], %s674_s19 }
 0x13f   : > { %p933_p1 = pnand %p936_p0, %p1135_p8 }
 0x141   : > { %p934_p2 = pneg %p933_p1 }
 0x143   : > { %1038 = dma.done.wait (%p934_p2), %s675_s23, 2048  }
 0x144   : > { %1040 = vsyncadd (%p934_p2), %s675_s23, 4294965248  ;;  %s16_s17 = sadd.s32 1, %s1063_s17   ;;  %s1468_s12 = smov %s1047_s13 }
 0x145   : > { %p13_p3 = scmp.ge.s32.totalorder %s16_s17, 4   ;;  %s1469_s13 = smov %s1051_s14 }
 0x146   : > { %s1470_s14 = smov %s1141_s25  ;;  %s1471_s15 = smov %s1059_s16 }
 0x147   : > { %s1472_s16 = smov %s1474_s20  ;;  %15 = sbr.rel (!%p13_p3) target bundleno = 4 (0x4), region = 73 }
 0x14c   :  { %680 = vsyncpa [#allocation3], 1 }
 0x14d   :  { %682 = vsyncpa [#allocation3 + $0x1], 1 }

</bundles_post_ra>
